<compile_context>
chip_gen: v7x
topology: tpu7x:2x2x1
jax: 0.10.0
libtpu: 0.0.40
codegen_flags: <defaults>
</compile_context>

<pallas_src>
import functools
import math

import jax
import jax.numpy as jnp
from jax.experimental import pallas as pl
from jax.experimental.pallas import tpu as pltpu

LANES = 128


def _resblock_kernel(x_ref, w1_ref, w2_ref, b_ref, ml_ref, mr_ref, o_ref):
    """conv1+BN1+ReLU -> conv2+BN2, fused 1x1 skip+BN, residual add, ReLU.

    x_ref : (3*Ci, T) bf16   im2col taps, lanes = densely packed b*l_out + j
    w1_ref: (2*Co, 3*Ci) bf16  rows [0:Co) conv1 (BN1 scale folded),
                               rows [Co:2Co) = [0 | skip 1x1 (BN folded) | 0]
    w2_ref: (3, Co, Co) bf16   tap-major conv2 weights, BN2 scale folded
    b_ref : (3, Co, 1) f32     [bias1, bias_skip, bias2] (BN folded)
    ml/mr : (1, T) f32         0.0 at a sequence's first/last position, else 1.0
    """
    c_out = o_ref.shape[0]

    # ---- conv1 (K = 3*Ci) + fused 1x1 skip conv: one MXU launch ----
    y_all = jnp.dot(w1_ref[...], x_ref[...], preferred_element_type=jnp.float32)
    y = jnp.maximum(y_all[:c_out] + b_ref[0], 0.0)      # conv1 + BN1 + ReLU  (f32)
    sk = y_all[c_out:] + b_ref[1]                       # skip conv + BN      (f32)

    # ---- conv2 (k=3, stride=1, pad=1): halo taps via XLU roll + resident masks.
    # pltpu.roll needs a non-negative shift -> the "-1" roll is shift T-1.
    t = y.shape[1]
    y_l = (pltpu.roll(y, 1, 1) * ml_ref[...]).astype(jnp.bfloat16)       # y[j-1]
    y_r = (pltpu.roll(y, t - 1, 1) * mr_ref[...]).astype(jnp.bfloat16)   # y[j+1]
    yb = y.astype(jnp.bfloat16)
    y2 = (jnp.dot(w2_ref[0], y_l, preferred_element_type=jnp.float32)
          + jnp.dot(w2_ref[1], yb, preferred_element_type=jnp.float32)
          + jnp.dot(w2_ref[2], y_r, preferred_element_type=jnp.float32))
    y2 = y2 + b_ref[2]

    # ---- residual add + ReLU; bf16 store halves output HBM traffic ----
    o_ref[...] = jnp.maximum(sk + y2, 0.0).astype(o_ref.dtype)


def _fold_bn(gamma, beta, mean, var, conv_bias, eps=1e-5):
    """Fold eval-mode BatchNorm1d (+conv bias) into per-channel scale/bias."""
    scale = gamma / jnp.sqrt(var + eps)
    bias = beta + scale * (conv_bias - mean)
    return scale[:, None].astype(jnp.float32), bias[:, None].astype(jnp.float32)


def _round_up(a, b):
    return (a + b - 1) // b * b


@functools.partial(jax.jit, static_argnames=("stride",))
def resblock_forward(x, params, stride):
    """x: (N, C_in, L) float32.  Returns (N, C_out, L_out) float32."""
    n, c_in, l = x.shape
    w1 = params["w1"]                                   # (Co, Ci, 3)
    c_out = w1.shape[0]
    l_out = (l - 1) // stride + 1                       # conv1 out length (k=3, pad=1)

    # ---- im2col: stack the 3 strided conv1 taps channel-wise (one K=3*Ci matmul)
    xp = jnp.pad(x, ((0, 0), (0, 0), (1, 1)))
    taps = [jax.lax.slice(xp, (0, 0, k), (n, c_in, k + stride * (l_out - 1) + 1),
                          (1, 1, stride)) for k in range(3)]       # 3 x (N, Ci, Lo)
    xt = jnp.concatenate(taps, axis=1)                              # (N, 3Ci, Lo)

    # ---- fold BN scales into the conv weights; biases stay per-channel ----
    s1, b1 = _fold_bn(params["bn1_g"], params["bn1_b"], params["bn1_m"],
                      params["bn1_v"], params["cb1"])
    s2, b2 = _fold_bn(params["bn2_g"], params["bn2_b"], params["bn2_m"],
                      params["bn2_v"], params["cb2"])
    ssk, bsk = _fold_bn(params["bnsk_g"], params["bnsk_b"], params["bnsk_m"],
                        params["bnsk_v"], params["cbsk"])

    w1_m = jnp.transpose(w1, (0, 2, 1)).reshape(c_out, 3 * c_in) * s1   # (Co, 3Ci)
    wsk = params["wsk"][:, :, 0].astype(jnp.float32) * ssk              # (Co, Ci)
    zeros = jnp.zeros((c_out, c_in), jnp.float32)
    skip_rows = jnp.concatenate([zeros, wsk, zeros], axis=1)            # center tap
    w_big = jnp.concatenate([w1_m, skip_rows], axis=0).astype(jnp.bfloat16)
    w2_t = (jnp.transpose(params["w2"], (2, 0, 1)) * s2[None, :, :]
            ).astype(jnp.bfloat16)                                      # (3, Co, Co)
    b_all = jnp.stack([b1, bsk, b2], axis=0)                            # (3, Co, 1)

    # ---- lane tiling: dense packing (lane = b*l_out + j).  Either one tile over
    # the tail-padded slab, or tiles of whole sequences so the conv2 roll+mask
    # halo never crosses a tile boundary.  Tile width from a VMEM budget
    # (conservative wrt v7x's 64 MiB/TC), not a fixed lane count.
    unit = LANES // math.gcd(l_out, LANES)        # min sequences per 128-aligned tile
    per_lane = 2 * (3 * c_in * 2 + c_out * 2) + 2 * 4   # dbl-buffered x/out + masks
    budget = 8 * 1024 * 1024                             # per-step VMEM target
    max_lanes = max(LANES, budget // per_lane // LANES * LANES)
    if n * l_out <= max_lanes or n <= unit:
        grid_len = 1                                     # single tile: pad tail only
        t_lanes = _round_up(n * l_out, LANES)
    else:
        nb = max(unit, min(max_lanes // l_out, n) // unit * unit)
        grid_len = (n + nb - 1) // nb
        t_lanes = nb * l_out
    total_lanes = grid_len * t_lanes
    # TODO(synk): when grid_len > 1 and odd, rebalance nb so v7x's 2 TensorCores
    #             split the grid evenly.

    xt = jnp.transpose(xt, (1, 0, 2)).reshape(3 * c_in, n * l_out)
    xt = jnp.pad(xt, ((0, 0), (0, total_lanes - n * l_out))).astype(jnp.bfloat16)

    # Precomputed boundary masks (resident in VMEM, constant index_map): the same
    # j % l_out pattern holds for every tile since tiles start at sequence starts.
    pos = jnp.arange(t_lanes, dtype=jnp.int32) % l_out
    mask_l = (pos != 0).astype(jnp.float32)[None, :]           # zero y[j-1] at j==0
    mask_r = (pos != l_out - 1).astype(jnp.float32)[None, :]   # zero y[j+1] at j==L-1

    # Generation-aware VMEM limit (v7x: 64 MiB/TC, v5e/v6e: 128 MiB).
    try:
        vmem_cap = int(pltpu.get_tpu_info().vmem_capacity_bytes)
    except Exception:
        vmem_cap = 64 * 1024 * 1024
    vmem_limit = min(max(vmem_cap * 3 // 4, 32 * 1024 * 1024), 100 * 1024 * 1024)

    full = lambda shape: pl.BlockSpec(shape, lambda i: (0,) * len(shape))

    out_flat = pl.pallas_call(
        _resblock_kernel,
        out_shape=jax.ShapeDtypeStruct((c_out, total_lanes), jnp.bfloat16),
        grid_spec=pltpu.PrefetchScalarGridSpec(
            num_scalar_prefetch=0,
            grid=(grid_len,),
            in_specs=[
                pl.BlockSpec((3 * c_in, t_lanes), lambda i: (0, i)),
                full((2 * c_out, 3 * c_in)),
                full((3, c_out, c_out)),
                full((3, c_out, 1)),
                full((1, t_lanes)),
                full((1, t_lanes)),
            ],
            out_specs=pl.BlockSpec((c_out, t_lanes), lambda i: (0, i)),
        ),
        compiler_params=pltpu.CompilerParams(
            dimension_semantics=("parallel",),
            vmem_limit_bytes=vmem_limit),
    )(xt, w_big, w2_t, b_all, mask_l, mask_r)

    # ---- back to the module's (N, C_out, L_out) f32 layout ----
    # TODO(synk): in a fused pipeline, keep the channel-major bf16 slab flowing
    #             into the next op instead of this slice+transpose pass.
    out = out_flat[:, :n * l_out].reshape(c_out, n, l_out)
    return jnp.transpose(out, (1, 0, 2)).astype(jnp.float32)


def _reference(x, params, stride):
    """Pure-JAX reference (lax conv) for correctness checking."""
    def conv1d(v, w, b, s, pad):
        y = jax.lax.conv_general_dilated(
            v, w, window_strides=(s,), padding=[(pad, pad)],
            dimension_numbers=("NCH", "OIH", "NCH"))
        return y + b[None, :, None]

    def bn(v, g, be, m, va, eps=1e-5):
        return (v - m[None, :, None]) / jnp.sqrt(va[None, :, None] + eps) \
            * g[None, :, None] + be[None, :, None]

    y = conv1d(x, params["w1"], params["cb1"], stride, 1)
    y = bn(y, params["bn1_g"], params["bn1_b"], params["bn1_m"], params["bn1_v"])
    y = jnp.maximum(y, 0.0)
    y = conv1d(y, params["w2"], params["cb2"], 1, 1)
    y = bn(y, params["bn2_g"], params["bn2_b"], params["bn2_m"], params["bn2_v"])
    sk = conv1d(x, params["wsk"], params["cbsk"], stride, 0)
    sk = bn(sk, params["bnsk_g"], params["bnsk_b"], params["bnsk_m"], params["bnsk_v"])
    return jnp.maximum(sk + y, 0.0)


def _init_params(key, c_in, c_out):
    ks = jax.random.split(key, 8)
    p = {
        "w1": jax.random.normal(ks[0], (c_out, c_in, 3), jnp.float32) * 0.2,
        "cb1": jax.random.normal(ks[1], (c_out,), jnp.float32) * 0.1,
        "w2": jax.random.normal(ks[2], (c_out, c_out, 3), jnp.float32) * 0.2,
        "cb2": jax.random.normal(ks[3], (c_out,), jnp.float32) * 0.1,
        "wsk": jax.random.normal(ks[4], (c_out, c_in, 1), jnp.float32) * 0.2,
        "cbsk": jax.random.normal(ks[5], (c_out,), jnp.float32) * 0.1,
    }
    for name, kk in (("bn1", ks[6]), ("bn2", ks[7]), ("bnsk", ks[0])):
        k1, k2, k3, k4 = jax.random.split(kk, 4)
        p[f"{name}_g"] = 1.0 + 0.1 * jax.random.normal(k1, (c_out,), jnp.float32)
        p[f"{name}_b"] = 0.1 * jax.random.normal(k2, (c_out,), jnp.float32)
        p[f"{name}_m"] = 0.1 * jax.random.normal(k3, (c_out,), jnp.float32)
        p[f"{name}_v"] = jnp.abs(1.0 + 0.1 * jax.random.normal(k4, (c_out,), jnp.float32))
    return p


if __name__ == "__main__":
    key = jax.random.PRNGKey(0)
    kx, kp = jax.random.split(key)

    N, C_IN, C_OUT, L, STRIDE = 2, 4, 8, 16, 2
    x = jax.random.normal(kx, (N, C_IN, L), jnp.float32)
    params = _init_params(kp, C_IN, C_OUT)

    out = jax.block_until_ready(resblock_forward(x, params, STRIDE))
    ref = _reference(x, params, STRIDE)

    assert out.shape == ref.shape, (out.shape, ref.shape)
    # bf16 matmuls / bf16 output store -> loosened tolerance vs the f32 reference
    assert jnp.allclose(out, ref, atol=5e-2, rtol=5e-2), \
        f"mismatch vs reference, max abs err {jnp.max(jnp.abs(out - ref))}"

    print("KERNEL_OK")
</pallas_src>

<mosaic_0001>
module attributes {stable_mosaic.version = 11 : i64} {
  func.func @_resblock_kernel(%arg0: i32, %arg1: memref<12x128xbf16, #tpu.memory_space<vmem>>, %arg2: memref<16x12xbf16, #tpu.memory_space<vmem>>, %arg3: memref<3x8x8xbf16, #tpu.memory_space<vmem>>, %arg4: memref<3x8x1xf32, #tpu.memory_space<vmem>>, %arg5: memref<1x128xf32, #tpu.memory_space<vmem>>, %arg6: memref<1x128xf32, #tpu.memory_space<vmem>>, %arg7: memref<8x128xbf16, #tpu.memory_space<vmem>>) attributes {dimension_semantics = [#tpu.dimension_semantics<parallel>], iteration_bounds = array<i64: 1>, scalar_prefetch = 0 : i64, scratch_operands = 0 : i64, tpu.core_type = #tpu.core_type<tc>, window_params = [{transform_indices = @transform_0, window_bounds = array<i64: 12, 128>}, {pipeline_mode = #tpu.pipeline_mode<synchronous>, transform_indices = @transform_1, window_bounds = array<i64: 16, 12>}, {pipeline_mode = #tpu.pipeline_mode<synchronous>, transform_indices = @transform_2, window_bounds = array<i64: 3, 8, 8>}, {pipeline_mode = #tpu.pipeline_mode<synchronous>, transform_indices = @transform_3, window_bounds = array<i64: 3, 8, 1>}, {pipeline_mode = #tpu.pipeline_mode<synchronous>, transform_indices = @transform_4, window_bounds = array<i64: 1, 128>}, {pipeline_mode = #tpu.pipeline_mode<synchronous>, transform_indices = @transform_5, window_bounds = array<i64: 1, 128>}, {transform_indices = @transform_6, window_bounds = array<i64: 8, 128>}]} {
    %c0 = arith.constant 0 : index
    %c0_0 = arith.constant 0 : index
    %0 = vector.load %arg2[%c0, %c0_0] : memref<16x12xbf16, #tpu.memory_space<vmem>>, vector<16x12xbf16>
    %c0_1 = arith.constant 0 : index
    %c0_2 = arith.constant 0 : index
    %1 = vector.load %arg1[%c0_1, %c0_2] : memref<12x128xbf16, #tpu.memory_space<vmem>>, vector<12x128xbf16>
    %cst = arith.constant dense<0.000000e+00> : vector<16x128xf32>
    %2 = tpu.matmul %0, %1, %cst {dimension_numbers = #tpu.dot_dimension_numbers<[1], [0], [0], [1], [0, 0, 1, 1], [], []>} : vector<16x12xbf16>, vector<12x128xbf16>, vector<16x128xf32> -> vector<16x128xf32>
    %3 = vector.extract_strided_slice %2 {offsets = [0, 0], sizes = [8, 128], strides = [1, 1]} : vector<16x128xf32> to vector<8x128xf32>
    %c0_3 = arith.constant 0 : index
    %c0_4 = arith.constant 0 : index
    %c0_5 = arith.constant 0 : index
    %4 = vector.load %arg4[%c0_3, %c0_4, %c0_5] : memref<3x8x1xf32, #tpu.memory_space<vmem>>, vector<1x8x1xf32>
    %5 = vector.shape_cast %4 : vector<1x8x1xf32> to vector<8x1xf32>
    %6 = vector.broadcast %5 : vector<8x1xf32> to vector<8x128xf32>
    %7 = arith.addf %3, %6 : vector<8x128xf32>
    %cst_6 = arith.constant 0.000000e+00 : f32
    %8 = vector.broadcast %cst_6 : f32 to vector<8x128xf32>
    %9 = arith.maximumf %7, %8 : vector<8x128xf32>
    %10 = vector.extract_strided_slice %2 {offsets = [8, 0], sizes = [8, 128], strides = [1, 1]} : vector<16x128xf32> to vector<8x128xf32>
    %c1 = arith.constant 1 : index
    %c0_7 = arith.constant 0 : index
    %c0_8 = arith.constant 0 : index
    %11 = vector.load %arg4[%c1, %c0_7, %c0_8] : memref<3x8x1xf32, #tpu.memory_space<vmem>>, vector<1x8x1xf32>
    %12 = vector.shape_cast %11 : vector<1x8x1xf32> to vector<8x1xf32>
    %13 = vector.broadcast %12 : vector<8x1xf32> to vector<8x128xf32>
    %14 = arith.addf %10, %13 : vector<8x128xf32>
    %c1_i32 = arith.constant 1 : i32
    %15 = tpu.dynamic_rotate %9 by %c1_i32 dim 1 : vector<8x128xf32>, i32 -> vector<8x128xf32>
    %c0_9 = arith.constant 0 : index
    %c0_10 = arith.constant 0 : index
    %16 = vector.load %arg5[%c0_9, %c0_10] : memref<1x128xf32, #tpu.memory_space<vmem>>, vector<1x128xf32>
    %17 = vector.broadcast %16 : vector<1x128xf32> to vector<8x128xf32>
    %18 = arith.mulf %15, %17 : vector<8x128xf32>
    %19 = arith.truncf %18 : vector<8x128xf32> to vector<8x128xbf16>
    %c127_i32 = arith.constant 127 : i32
    %20 = tpu.dynamic_rotate %9 by %c127_i32 dim 1 : vector<8x128xf32>, i32 -> vector<8x128xf32>
    %c0_11 = arith.constant 0 : index
    %c0_12 = arith.constant 0 : index
    %21 = vector.load %arg6[%c0_11, %c0_12] : memref<1x128xf32, #tpu.memory_space<vmem>>, vector<1x128xf32>
    %22 = vector.broadcast %21 : vector<1x128xf32> to vector<8x128xf32>
    %23 = arith.mulf %20, %22 : vector<8x128xf32>
    %24 = arith.truncf %23 : vector<8x128xf32> to vector<8x128xbf16>
    %25 = arith.truncf %9 : vector<8x128xf32> to vector<8x128xbf16>
    %c0_13 = arith.constant 0 : index
    %c0_14 = arith.constant 0 : index
    %c0_15 = arith.constant 0 : index
    %26 = vector.load %arg3[%c0_13, %c0_14, %c0_15] : memref<3x8x8xbf16, #tpu.memory_space<vmem>>, vector<1x8x8xbf16>
    %27 = vector.shape_cast %26 : vector<1x8x8xbf16> to vector<8x8xbf16>
    %cst_16 = arith.constant dense<0.000000e+00> : vector<8x128xf32>
    %28 = tpu.matmul %27, %19, %cst_16 {dimension_numbers = #tpu.dot_dimension_numbers<[1], [0], [0], [1], [0, 0, 1, 1], [], []>} : vector<8x8xbf16>, vector<8x128xbf16>, vector<8x128xf32> -> vector<8x128xf32>
    %c1_17 = arith.constant 1 : index
    %c0_18 = arith.constant 0 : index
    %c0_19 = arith.constant 0 : index
    %29 = vector.load %arg3[%c1_17, %c0_18, %c0_19] : memref<3x8x8xbf16, #tpu.memory_space<vmem>>, vector<1x8x8xbf16>
    %30 = vector.shape_cast %29 : vector<1x8x8xbf16> to vector<8x8xbf16>
    %cst_20 = arith.constant dense<0.000000e+00> : vector<8x128xf32>
    %31 = tpu.matmul %30, %25, %cst_20 {dimension_numbers = #tpu.dot_dimension_numbers<[1], [0], [0], [1], [0, 0, 1, 1], [], []>} : vector<8x8xbf16>, vector<8x128xbf16>, vector<8x128xf32> -> vector<8x128xf32>
    %32 = arith.addf %28, %31 : vector<8x128xf32>
    %c2 = arith.constant 2 : index
    %c0_21 = arith.constant 0 : index
    %c0_22 = arith.constant 0 : index
    %33 = vector.load %arg3[%c2, %c0_21, %c0_22] : memref<3x8x8xbf16, #tpu.memory_space<vmem>>, vector<1x8x8xbf16>
    %34 = vector.shape_cast %33 : vector<1x8x8xbf16> to vector<8x8xbf16>
    %cst_23 = arith.constant dense<0.000000e+00> : vector<8x128xf32>
    %35 = tpu.matmul %34, %24, %cst_23 {dimension_numbers = #tpu.dot_dimension_numbers<[1], [0], [0], [1], [0, 0, 1, 1], [], []>} : vector<8x8xbf16>, vector<8x128xbf16>, vector<8x128xf32> -> vector<8x128xf32>
    %36 = arith.addf %32, %35 : vector<8x128xf32>
    %c2_24 = arith.constant 2 : index
    %c0_25 = arith.constant 0 : index
    %c0_26 = arith.constant 0 : index
    %37 = vector.load %arg4[%c2_24, %c0_25, %c0_26] : memref<3x8x1xf32, #tpu.memory_space<vmem>>, vector<1x8x1xf32>
    %38 = vector.shape_cast %37 : vector<1x8x1xf32> to vector<8x1xf32>
    %39 = vector.broadcast %38 : vector<8x1xf32> to vector<8x128xf32>
    %40 = arith.addf %36, %39 : vector<8x128xf32>
    %41 = arith.addf %14, %40 : vector<8x128xf32>
    %cst_27 = arith.constant 0.000000e+00 : f32
    %42 = vector.broadcast %cst_27 : f32 to vector<8x128xf32>
    %43 = arith.maximumf %41, %42 : vector<8x128xf32>
    %44 = arith.truncf %43 : vector<8x128xf32> to vector<8x128xbf16>
    %c0_28 = arith.constant 0 : index
    %c0_29 = arith.constant 0 : index
    %45 = vector.load %arg7[%c0_28, %c0_29] : memref<8x128xbf16, #tpu.memory_space<vmem>>, vector<8x128xbf16>
    tpu.vector_store %arg7[%c0_28, %c0_29], %44 {strides = array<i32>} : memref<8x128xbf16, #tpu.memory_space<vmem>>, vector<8x128xbf16>,
    return
  }
  func.func @transform_0(%arg0: i32) -> (i32, i32) {
    %c0_i32 = arith.constant 0 : i32
    %c0_i32_0 = arith.constant 0 : i32
    return %c0_i32, %arg0 : i32, i32
  }
  func.func @transform_1(%arg0: i32) -> (i32, i32) {
    %c0_i32 = arith.constant 0 : i32
    %c0_i32_0 = arith.constant 0 : i32
    %c0_i32_1 = arith.constant 0 : i32
    return %c0_i32, %c0_i32_0 : i32, i32
  }
  func.func @transform_2(%arg0: i32) -> (i32, i32, i32) {
    %c0_i32 = arith.constant 0 : i32
    %c0_i32_0 = arith.constant 0 : i32
    %c0_i32_1 = arith.constant 0 : i32
    %c0_i32_2 = arith.constant 0 : i32
    return %c0_i32, %c0_i32_0, %c0_i32_1 : i32, i32, i32
  }
  func.func @transform_3(%arg0: i32) -> (i32, i32, i32) {
    %c0_i32 = arith.constant 0 : i32
    %c0_i32_0 = arith.constant 0 : i32
    %c0_i32_1 = arith.constant 0 : i32
    %c0_i32_2 = arith.constant 0 : i32
    return %c0_i32, %c0_i32_0, %c0_i32_1 : i32, i32, i32
  }
  func.func @transform_4(%arg0: i32) -> (i32, i32) {
    %c0_i32 = arith.constant 0 : i32
    %c0_i32_0 = arith.constant 0 : i32
    %c0_i32_1 = arith.constant 0 : i32
    return %c0_i32, %c0_i32_0 : i32, i32
  }
  func.func @transform_5(%arg0: i32) -> (i32, i32) {
    %c0_i32 = arith.constant 0 : i32
    %c0_i32_0 = arith.constant 0 : i32
    %c0_i32_1 = arith.constant 0 : i32
    return %c0_i32, %c0_i32_0 : i32, i32
  }
  func.func @transform_6(%arg0: i32) -> (i32, i32) {
    %c0_i32 = arith.constant 0 : i32
    %c0_i32_0 = arith.constant 0 : i32
    return %c0_i32, %arg0 : i32, i32
  }
}

</mosaic_0001>

<bundles_post_ra>
// kernel: resblock_forward.1
= control target key start
LH: loop header
LB: loop body
LE: loop exit
PB: predicated region body
PF: predicated region fallthrough
CT: control target
= control target key end

     0   :  { %vm42_vm0 = vcmask 1045504   ;;  %v341_v0 = vmov 0.0   ;;  %vm342_vm1 = vmmov 0   ;;  %v343_v4 = vmov 0   ;;  %s424_s0 = inlined_call_operand.vmem [shape: bf16[12,128], index: 0, kind: input, shape index: {}]   ;;  %s425_s1 = inlined_call_operand.vmem [shape: bf16[16,12], index: 1, kind: input, shape index: {}]   ;;  %s426_s3 = inlined_call_operand.vmem [shape: f32[3,8,1], index: 3, kind: input, shape index: {}]   ;;  %s427_s2 = inlined_call_operand.vmem [shape: bf16[3,8,8], index: 2, kind: input, shape index: {}]   ;;  %s428_s5 = inlined_call_operand.vmem [shape: f32[1,128], index: 5, kind: input, shape index: {}]   ;;  %s429_s4 = inlined_call_operand.vmem [shape: f32[1,128], index: 4, kind: input, shape index: {}]   ;;  %s430_s6 = inlined_call_operand.vmem [shape: bf16[8,128], index: 6, kind: output, shape index: {}]  }
   0x1   :  { %308 = vmatprep.subr.bf16.mxu0 %v341_v0  ;;  %v339_v1 = vld [vmem:[%s424_s0] sm:$0x3f]   ;;  %310 = vmatprep.mubr.msk.bf16.mxu0 %vm342_vm1, %v341_v0  ;;  %vm38_vm2 = vcmask 97280   ;;  %vm133_vm3 = vcmask 1043456   ;;  %s344_s0 = smov 127   ;;  %v291_v14 = vld [vmem:[%s426_s3 + $0x8] sm:$0xff] }
   0x2   :  { %314 = vmatprep.subr.bf16.mxu1 %v341_v0  ;;  %316 = vmatprep.mubr.msk.bf16.mxu1 %vm342_vm1, %v341_v0  ;;  %v44_v2 = vsel %vm42_vm0, %v339_v1, 0  ;;  %v340_v3 = vld [vmem:[%s425_s1] sm:$0xff]   ;;  %s345_s1 = smov 1   ;;  %v299_v15 = vld [vmem:[%s426_s3 + $0x10] sm:$0xff]  ;;  %vm129_vm4 = vcmask 64512  }
   0x3   :  { %337 = vset.pattern.permute.xlu0 %v343_v4  ;;  %v87_v5 = vld [vmem:[%s426_s3] sm:$0xff]  ;;  %338 = vset.pattern.permute.xlu1 %v343_v4  ;;  %v297_v29 = vld [vmem:[%s427_s2 + $0x8] sm:$0xf] }
   0x4   :  { %309 = vmatpush3.bf16.msra.mxu0 %v44_v2  ;;  %90 = vperm.xlu0 %337, %v87_v5   ;;  %v294_v17 = vld [vmem:[%s427_s2 + $0x4] sm:$0xf]  ;;  %v293_v18 = vld [vmem:[%s428_s5] ss:$0 sm:$0xff] }
   0x5   :  { %320 = vmatprep.subr.bf16.mxu0 %v341_v0  ;;  %v292_v19 = vld [vmem:[%s429_s4] ss:$0 sm:$0xff] }
   0x6   :  { %v126_v28 = vld [vmem:[%s427_s2] sm:$0xf] }
   0x7   :  { %311 = vmatmul.mubr.msk.bf16.vlgmr.msra.gmra.mrb[0].mxu0 %vm38_vm2, %v340_v3 }
   0x8   :  { %322 = vmatprep.mubr.msk.bf16.mxu0 %vm342_vm1, %v341_v0 }
  0x83   :  { %v91_v6 = vpop.permute.xlu0 %90 }
  0xda   :  { %v80_v7 = vpop.f32.mrb[0].mxu0 }
  0xdb   :  { %v93_v8 = vadd.f32 %v91_v6, %v80_v7  ;;  %v312_v9 = vpop.f32.mrb[1].mxu0 }
  0xdc   :  { %v83_v10 = vpop.f32.mrb[2].mxu0 }
  0xdd   :  { %v94_v11 = vmax.f32 %v93_v8, 0.0  ;;  %v313_v12 = vpop.f32.mrb[3].mxu0 }
  0xdf   :  { %114 = vrot.lane.b32.xlu1 %v94_v11, %s344_s0  ;;  %103 = vrot.lane.b32.xlu0 %v94_v11, %s345_s1  ;;  %v125_v13 = vpack.c.bf16 %v94_v11, %v94_v11 }
  0xe1   :  { %v135_v16 = vsel %vm133_vm3, %v125_v13, 0 }
  0xe2   :  { %315 = vmatpush3.bf16.msra.mxu1 %v135_v16 }
  0xe3   :  { %99 = vperm.xlu1 %338, %v291_v14   ;;  %276 = vperm.xlu0 %337, %v299_v15  }
  0xe4   :  { %326 = vmatprep.subr.bf16.mxu1 %v341_v0 }
  0xe5   :  { %317 = vmatmul.mubr.msk.bf16.vlgmr.msra.gmra.mrb[0].mxu1 %vm129_vm4, %v294_v17 }
  0xe6   :  { %328 = vmatprep.mubr.msk.bf16.mxu1 %vm342_vm1, %v341_v0 }
 0x151   :  { %v115_v20 = vpop.permute.xlu1 %114  ;;  %v104_v21 = vpop.permute.xlu0 %103 }
 0x152   :  { %v123_v22 = vmul.f32 %v293_v18, %v115_v20  ;;  %v112_v23 = vmul.f32 %v292_v19, %v104_v21 }
 0x154   :  { %v124_v24 = vpack.c.bf16 %v123_v22, %v123_v22  ;;  %v113_v25 = vpack.c.bf16 %v112_v23, %v112_v23 }
 0x156   :  { %v229_v26 = vsel %vm133_vm3, %v124_v24, 0  ;;  %v181_v27 = vsel %vm133_vm3, %v113_v25, 0 }
 0x157   :  { %321 = vmatpush3.bf16.msra.mxu0 %v181_v27  ;;  %327 = vmatpush3.bf16.msra.mxu1 %v229_v26 }
 0x15a   :  { %323 = vmatmul.mubr.msk.bf16.vlgmr.msra.gmra.mrb[4].mxu0 %vm129_vm4, %v126_v28  ;;  %329 = vmatmul.mubr.msk.bf16.vlgmr.msra.gmra.mrb[4].mxu1 %vm129_vm4, %v297_v29 }
 0x162   :  { %v100_v34 = vpop.permute.xlu1 %99  ;;  %v277_v45 = vpop.permute.xlu0 %276 }
 0x163   :  { %v102_v46 = vadd.f32 %v100_v34, %v83_v10 }
 0x1b8   :  { %v171_v30 = vpop.f32.mrb[0].mxu1 }
 0x1b9   :  { %v318_v31 = vpop.f32.mrb[1].mxu1 }
 0x1ba   :  { %v174_v32 = vpop.f32.mrb[2].mxu1 }
 0x1bb   :  { %v319_v33 = vpop.f32.mrb[3].mxu1 }
 0x22d   :  { %v217_v35 = vpop.f32.mrb[4].mxu0  ;;  %v265_v36 = vpop.f32.mrb[4].mxu1 }
 0x22e   :  { %v218_v37 = vadd.f32 %v217_v35, %v171_v30  ;;  %v324_v38 = vpop.f32.mrb[5].mxu0  ;;  %v330_v39 = vpop.f32.mrb[5].mxu1 }
 0x22f   :  { %v220_v40 = vpop.f32.mrb[6].mxu0  ;;  %v268_v41 = vpop.f32.mrb[6].mxu1 }
 0x230   :  { %v271_v42 = vadd.f32 %v265_v36, %v218_v37  ;;  %v325_v43 = vpop.f32.mrb[7].mxu0  ;;  %v331_v44 = vpop.f32.mrb[7].mxu1 }
 0x232   :  { %v279_v47 = vadd.f32 %v277_v45, %v271_v42 }
 0x234   :  { %v280_v48 = vadd.f32 %v279_v47, %v102_v46 }
 0x236   :  { %v281_v49 = vmax.f32 %v280_v48, 0.0 }
 0x238   :  { %v282_v50 = vpack.c.bf16 %v281_v49, %v281_v49 }
 0x23a   :  { %283 = vst [vmem:[%s430_s6] sm:$0xf] %v282_v50 }

</bundles_post_ra>
